<compile_context>
chip_gen: v6e
topology: v6e:2x2x1
jax: 0.10.0
libtpu: 0.0.40
codegen_flags: <defaults>
</compile_context>

<pallas_src>
import functools

import jax
import jax.numpy as jnp
from jax.experimental import pallas as pl
from jax.experimental.pallas import tpu as pltpu


def _round_up(x, m):
    return ((x + m - 1) // m) * m


def _stacked_lstm_kernel(x_ref, h0_ref, c0_ref, w_ref, b_ref,
                         h1_ref, c1_ref, xh_ref, *, d_max, hid, batch_block):
    """One grid step = one LSTM layer for one batch tile.

    Grid = (num_layers, num_batch_tiles), layer outer / batch inner.
    xh_ref: VMEM scratch (batch_padded, d_max + hid) holding the fused operand
    [input_feed | h_prev_layer]; it persists across all grid iterations so the
    feed written at layer l is consumed at layer l+1 for the same batch rows.
    w_ref block: rows [0, d_max) = W_ih (zero-padded), rows [d_max, ...) = W_hh.
    """
    layer = pl.program_id(0)
    num_layers = pl.num_programs(0)
    row0 = pl.multiple_of(pl.program_id(1) * batch_block, batch_block)
    rows = pl.ds(row0, batch_block)

    # Layer 0 of each batch tile: seed the feed lanes with the external input.
    @pl.when(layer == 0)
    def _seed_feed():
        xh_ref[rows, :d_max] = x_ref[...].astype(xh_ref.dtype)

    # Recurrent half of the fused operand (this layer's h_0 for this tile).
    xh_ref[rows, d_max:] = h0_ref[0].astype(xh_ref.dtype)

    # Single fused MXU matmul: (bb, d_max+H) @ (d_max+H, 4H), f32 accumulate.
    gates = jnp.dot(xh_ref[rows, :], w_ref[0],
                    preferred_element_type=jnp.float32) + b_ref[0]

    # Gate math stays f32 (v5e VPU/EUP have no bf16 path).
    i_g = jax.nn.sigmoid(gates[:, 0 * hid:1 * hid])
    f_g = jax.nn.sigmoid(gates[:, 1 * hid:2 * hid])
    g_g = jnp.tanh(gates[:, 2 * hid:3 * hid])
    o_g = jax.nn.sigmoid(gates[:, 3 * hid:4 * hid])

    c_new = f_g * c0_ref[0].astype(jnp.float32) + i_g * g_g
    h_new = o_g * jnp.tanh(c_new)

    h1_ref[0] = h_new.astype(h1_ref.dtype)
    c1_ref[0] = c_new.astype(c1_ref.dtype)

    # Input feed for the next layer (eval-mode dropout == identity).
    @pl.when(layer + 1 < num_layers)
    def _next_feed():
        xh_ref[rows, :hid] = h_new.astype(xh_ref.dtype)
        if d_max > hid:
            # Defensive: clear stale feed lanes so correctness never depends
            # on the packer's zero-row contract for layers > 0.
            xh_ref[rows, hid:d_max] = jnp.zeros(
                (batch_block, d_max - hid), xh_ref.dtype)


def stacked_lstm_forward(input_feed, hidden, w_stacked, b_stacked,
                         *, batch_block=None, dropout_p=0.0,
                         batch_core_parallel=False):
    """Mirrors StackedLSTM.forward (eval mode).

    input_feed: (B, input_size) f32
    hidden:     (h_0, c_0), each (L, B, H) f32
    w_stacked:  (L, d_max + Hp, 4*Hp)  fused [W_ih; W_hh] per layer (bf16/f32)
    b_stacked:  (L, 1, 4*Hp) f32       (b_ih + b_hh per layer, gate-padded)
    Returns (input_feed_out (B, H), (h_1, c_1) each (L, B, H)).
    """
    del dropout_p  # eval-mode forward: nn.Dropout is identity.
    h_0, c_0 = hidden
    num_layers, batch, hid = h_0.shape
    hid_p = b_stacked.shape[-1] // 4
    d_max = w_stacked.shape[1] - hid_p
    w_dtype = w_stacked.dtype
    itemw = jnp.dtype(w_dtype).itemsize

    # bf16 operands pack 16 sublanes per vreg; keep the MXU M dim full.
    sub = 16 if itemw == 2 else 8
    batch_p = _round_up(batch, sub)
    if batch_block is None:
        batch_block = batch_p  # single batch tile: weights streamed once
    assert batch_p % batch_block == 0 and batch_block % sub == 0
    num_batch_tiles = batch_p // batch_block

    # Zero-pad operands: batch -> batch_p, input -> d_max lanes, H -> Hp lanes.
    x = jnp.zeros((batch_p, d_max), jnp.float32)
    x = x.at[:batch, :input_feed.shape[1]].set(input_feed.astype(jnp.float32))
    h0 = jnp.zeros((num_layers, batch_p, hid_p), jnp.float32)
    h0 = h0.at[:, :batch, :hid].set(h_0.astype(jnp.float32))
    c0 = jnp.zeros((num_layers, batch_p, hid_p), jnp.float32)
    c0 = c0.at[:, :batch, :hid].set(c_0.astype(jnp.float32))

    kernel = functools.partial(_stacked_lstm_kernel, d_max=d_max, hid=hid_p,
                               batch_block=batch_block)

    # Cost estimate: weight slab is read exactly once under this grid order.
    w_bytes = num_layers * (d_max + hid_p) * 4 * hid_p * itemw
    x_bytes = batch_p * d_max * 4 * (1 if num_batch_tiles == 1 else num_layers)
    state_bytes = 4 * num_layers * batch_p * hid_p * 4  # h0,c0 read; h1,c1 write
    bytes_accessed = int(w_bytes + b_stacked.size * 4 + x_bytes + state_bytes)
    flops = 2 * batch_p * (d_max + hid_p) * 4 * hid_p * num_layers

    # Explicit scoped-VMEM budget: 2x (double-buffered) blocks + feed scratch
    # + gate/temporary headroom.  v5e default (16 MiB) is too small at real H.
    w_blk = (d_max + hid_p) * 4 * hid_p * itemw
    vmem_needed = (2 * (w_blk + 4 * hid_p * 4 + batch_block * d_max * 4
                        + 4 * batch_block * hid_p * 4)
                   + batch_p * (d_max + hid_p) * itemw
                   + 16 * batch_block * hid_p * 4 + (2 << 20))
    vmem_limit = int(min(max(vmem_needed, 32 << 20), 96 << 20))

    # v7x megacore: only CORE_PARALLEL engages the second TensorCore, and only
    # pays off with >= 2 batch tiles on compute/activation-bound shapes.
    batch_sem = pltpu.CORE_PARALLEL if batch_core_parallel else pltpu.ARBITRARY

    h_1, c_1 = pl.pallas_call(
        kernel,
        out_shape=(
            jax.ShapeDtypeStruct((num_layers, batch_p, hid_p), jnp.float32),
            jax.ShapeDtypeStruct((num_layers, batch_p, hid_p), jnp.float32)),
        grid_spec=pltpu.PrefetchScalarGridSpec(
            num_scalar_prefetch=0,
            # Layer OUTER, batch tile INNER: weight block index (l, 0, 0) is
            # invariant along the inner axis -> each layer's weights DMA'd
            # exactly once no matter how batch is tiled.
            grid=(num_layers, num_batch_tiles),
            in_specs=[
                pl.BlockSpec((batch_block, d_max), lambda l, b: (b, 0)),
                pl.BlockSpec((1, batch_block, hid_p), lambda l, b: (l, b, 0)),
                pl.BlockSpec((1, batch_block, hid_p), lambda l, b: (l, b, 0)),
                pl.BlockSpec((1, d_max + hid_p, 4 * hid_p),
                             lambda l, b: (l, 0, 0)),
                pl.BlockSpec((1, 1, 4 * hid_p), lambda l, b: (l, 0, 0)),
            ],
            out_specs=(
                pl.BlockSpec((1, batch_block, hid_p), lambda l, b: (l, b, 0)),
                pl.BlockSpec((1, batch_block, hid_p), lambda l, b: (l, b, 0)),
            ),
            scratch_shapes=[
                pltpu.VMEM((batch_p, d_max + hid_p), w_dtype)],
        ),
        compiler_params=pltpu.CompilerParams(
            dimension_semantics=(pltpu.ARBITRARY, batch_sem),
            vmem_limit_bytes=vmem_limit),
        # h_1 / c_1 reuse the (padded) h_0 / c_0 HBM buffers in place: each
        # (l, b) block is read before it is written and never read again.
        input_output_aliases={1: 0, 2: 1},
        cost_estimate=pl.CostEstimate(
            flops=int(flops),
            transcendentals=int(5 * batch_p * hid_p * num_layers),
            bytes_accessed=bytes_accessed),
    )(x, h0, c0, w_stacked, b_stacked)

    h_1 = h_1[:, :batch, :hid]
    c_1 = c_1[:, :batch, :hid]
    # Returned input_feed is h of the last layer (no dropout after the stack).
    return h_1[-1], (h_1, c_1)


def init_torch_lstm_params(key, num_layers, input_size, rnn_size,
                           dtype=jnp.float32):
    """Synthetic per-layer (W_ih [Din,4H], W_hh [H,4H], b [1,4H]) weights with
    PyTorch LSTMCell init range, stored pre-transposed for `x @ W`."""
    params = []
    d = input_size
    scale = 1.0 / float(rnn_size) ** 0.5
    for _ in range(num_layers):
        key, k1, k2, k3, k4 = jax.random.split(key, 5)
        w_ih = jax.random.uniform(k1, (d, 4 * rnn_size), dtype, -scale, scale)
        w_hh = jax.random.uniform(k2, (rnn_size, 4 * rnn_size), dtype,
                                  -scale, scale)
        b_ih = jax.random.uniform(k3, (1, 4 * rnn_size), dtype, -scale, scale)
        b_hh = jax.random.uniform(k4, (1, 4 * rnn_size), dtype, -scale, scale)
        params.append((w_ih, w_hh, b_ih + b_hh))
        d = rnn_size
    return params


def pack_params(params, rnn_size, weight_dtype=jnp.bfloat16):
    """Stack per-layer weights into one (L, d_max + Hp, 4*Hp) fused slab and a
    (L, 1, 4*Hp) bias, with the hidden size padded to Hp = round_up(H, 128)
    per gate so every gate slice / h / c store in the kernel is whole 128-lane
    vregs.  Unused rows/columns are zero, so padded lanes stay exactly zero."""
    num_layers = len(params)
    hid = rnn_size
    hid_p = _round_up(hid, 128)
    d_in0 = params[0][0].shape[0]
    d_max = _round_up(max(d_in0, hid_p), 128)

    w = jnp.zeros((num_layers, d_max + hid_p, 4 * hid_p), jnp.float32)
    b = jnp.zeros((num_layers, 1, 4 * hid_p), jnp.float32)
    for l, (w_ih, w_hh, bias) in enumerate(params):
        d_in = w_ih.shape[0]
        for g in range(4):
            col0 = g * hid_p
            w = w.at[l, :d_in, col0:col0 + hid].set(
                w_ih[:, g * hid:(g + 1) * hid])
            w = w.at[l, d_max:d_max + hid, col0:col0 + hid].set(
                w_hh[:, g * hid:(g + 1) * hid])
            b = b.at[l, 0, col0:col0 + hid].set(bias[0, g * hid:(g + 1) * hid])
    return w.astype(weight_dtype), b


def stacked_lstm_reference(input_feed, hidden, params):
    """Pure-JAX reference on the raw (unpacked, unpadded) per-layer params,
    matching the kernel's numerics (bf16-rounded operands, f32 accumulation)."""
    h_0, c_0 = hidden
    hid = h_0.shape[-1]
    feed = input_feed.astype(jnp.float32)
    h1, c1 = [], []
    for l, (w_ih, w_hh, bias) in enumerate(params):
        w = jnp.concatenate([w_ih, w_hh], axis=0)
        w = w.astype(jnp.bfloat16).astype(jnp.float32)
        xh = jnp.concatenate([feed, h_0[l].astype(jnp.float32)], axis=1)
        xh = xh.astype(jnp.bfloat16).astype(jnp.float32)
        gates = xh @ w + bias
        i_g = jax.nn.sigmoid(gates[:, 0 * hid:1 * hid])
        f_g = jax.nn.sigmoid(gates[:, 1 * hid:2 * hid])
        g_g = jnp.tanh(gates[:, 2 * hid:3 * hid])
        o_g = jax.nn.sigmoid(gates[:, 3 * hid:4 * hid])
        c_new = f_g * c_0[l].astype(jnp.float32) + i_g * g_g
        h_new = o_g * jnp.tanh(c_new)
        feed = h_new
        h1.append(h_new)
        c1.append(c_new)
    return feed, (jnp.stack(h1), jnp.stack(c1))


if __name__ == "__main__":
    num_layers = 3
    input_size = 80      # != rnn_size, exercises first-layer W_ih padding
    rnn_size = 96        # not a multiple of 128: exercises hidden padding
    batch = 8            # padded to 16 (bf16 operand sublane packing)
    dropout_p = 0.3      # identity in eval-mode forward

    key = jax.random.PRNGKey(0)
    kp, kx, kh, kc = jax.random.split(key, 4)

    params = init_torch_lstm_params(kp, num_layers, input_size, rnn_size)
    w_stacked, b_stacked = pack_params(params, rnn_size, jnp.bfloat16)

    input_feed = jax.random.normal(kx, (batch, input_size), jnp.float32)
    h_0 = jax.random.normal(kh, (num_layers, batch, rnn_size), jnp.float32)
    c_0 = jax.random.normal(kc, (num_layers, batch, rnn_size), jnp.float32)

    fwd = jax.jit(functools.partial(stacked_lstm_forward, dropout_p=dropout_p))
    out_feed, (h_1, c_1) = fwd(input_feed, (h_0, c_0), w_stacked, b_stacked)
    jax.block_until_ready((out_feed, h_1, c_1))

    ref_feed, (ref_h, ref_c) = stacked_lstm_reference(
        input_feed, (h_0, c_0), params)

    assert out_feed.shape == (batch, rnn_size)
    assert h_1.shape == (num_layers, batch, rnn_size)
    assert c_1.shape == (num_layers, batch, rnn_size)
    assert bool(jnp.all(jnp.isfinite(h_1))) and bool(jnp.all(jnp.isfinite(c_1)))
    assert bool(jnp.allclose(h_1, ref_h, atol=2e-2, rtol=2e-2))
    assert bool(jnp.allclose(c_1, ref_c, atol=2e-2, rtol=2e-2))
    assert bool(jnp.allclose(out_feed, ref_feed, atol=2e-2, rtol=2e-2))

    print("KERNEL_OK")
</pallas_src>

<mosaic_0001>
module attributes {stable_mosaic.version = 11 : i64} {
  func.func @_stacked_lstm_kernel(%arg0: i32, %arg1: i32, %arg2: memref<16x128xf32, #tpu.memory_space<vmem>>, %arg3: memref<1x16x128xf32, #tpu.memory_space<vmem>>, %arg4: memref<1x16x128xf32, #tpu.memory_space<vmem>>, %arg5: memref<1x256x512xbf16, #tpu.memory_space<vmem>>, %arg6: memref<1x1x512xf32, #tpu.memory_space<vmem>>, %arg7: memref<1x16x128xf32, #tpu.memory_space<vmem>>, %arg8: memref<1x16x128xf32, #tpu.memory_space<vmem>>, %arg9: memref<16x256xbf16, #tpu.memory_space<vmem>>) attributes {dimension_semantics = [#tpu.dimension_semantics<arbitrary>, #tpu.dimension_semantics<arbitrary>], iteration_bounds = array<i64: 3, 1>, scalar_prefetch = 0 : i64, scratch_operands = 1 : i64, tpu.core_type = #tpu.core_type<tc>, window_params = [{transform_indices = @transform_0, window_bounds = array<i64: 16, 128>}, {transform_indices = @transform_1, window_bounds = array<i64: 1, 16, 128>}, {transform_indices = @transform_2, window_bounds = array<i64: 1, 16, 128>}, {transform_indices = @transform_3, window_bounds = array<i64: 1, 256, 512>}, {transform_indices = @transform_4, window_bounds = array<i64: 1, 1, 512>}, {transform_indices = @transform_5, window_bounds = array<i64: 1, 16, 128>}, {transform_indices = @transform_6, window_bounds = array<i64: 1, 16, 128>}]} {
    %c16_i32 = arith.constant 16 : i32
    %0 = arith.muli %arg1, %c16_i32 : i32
    %1 = tpu.assume_multiple %0, 16 : i32
    %c0_i32 = arith.constant 0 : i32
    %2 = arith.cmpi eq, %arg0, %c0_i32 : i32
    %3 = arith.extui %2 : i1 to i32
    %c0_i32_0 = arith.constant 0 : i32
    %4 = arith.cmpi ne, %3, %c0_i32_0 : i32
    scf.if %4 {
      %c0_23 = arith.constant 0 : index
      %c0_24 = arith.constant 0 : index
      %56 = vector.load %arg2[%c0_23, %c0_24] : memref<16x128xf32, #tpu.memory_space<vmem>>, vector<16x128xf32>
      %57 = arith.truncf %56 : vector<16x128xf32> to vector<16x128xbf16>
      %58 = arith.index_cast %1 : i32 to index
      %c0_25 = arith.constant 0 : index
      %59 = vector.load %arg9[%58, %c0_25] : memref<16x256xbf16, #tpu.memory_space<vmem>>, vector<16x128xbf16>
      tpu.vector_store %arg9[%58, %c0_25], %57 {strides = array<i32>} : memref<16x256xbf16, #tpu.memory_space<vmem>>, vector<16x128xbf16>,
    } else {
    }
    %c0 = arith.constant 0 : index
    %c0_1 = arith.constant 0 : index
    %c0_2 = arith.constant 0 : index
    %5 = vector.load %arg3[%c0, %c0_1, %c0_2] : memref<1x16x128xf32, #tpu.memory_space<vmem>>, vector<1x16x128xf32>
    %6 = vector.shape_cast %5 : vector<1x16x128xf32> to vector<16x128xf32>
    %7 = arith.truncf %6 : vector<16x128xf32> to vector<16x128xbf16>
    %8 = arith.index_cast %1 : i32 to index
    %c128 = arith.constant 128 : index
    %9 = vector.load %arg9[%8, %c128] : memref<16x256xbf16, #tpu.memory_space<vmem>>, vector<16x128xbf16>
    tpu.vector_store %arg9[%8, %c128], %7 {strides = array<i32>} : memref<16x256xbf16, #tpu.memory_space<vmem>>, vector<16x128xbf16>,
    %10 = arith.index_cast %1 : i32 to index
    %c0_3 = arith.constant 0 : index
    %11 = vector.load %arg9[%10, %c0_3] : memref<16x256xbf16, #tpu.memory_space<vmem>>, vector<16x256xbf16>
    %c0_4 = arith.constant 0 : index
    %c0_5 = arith.constant 0 : index
    %c0_6 = arith.constant 0 : index
    %12 = vector.load %arg5[%c0_4, %c0_5, %c0_6] : memref<1x256x512xbf16, #tpu.memory_space<vmem>>, vector<1x256x512xbf16>
    %13 = vector.shape_cast %12 : vector<1x256x512xbf16> to vector<256x512xbf16>
    %cst = arith.constant dense<0.000000e+00> : vector<16x512xf32>
    %14 = tpu.matmul %11, %13, %cst {dimension_numbers = #tpu.dot_dimension_numbers<[1], [0], [0], [1], [0, 0, 1, 1], [], []>} : vector<16x256xbf16>, vector<256x512xbf16>, vector<16x512xf32> -> vector<16x512xf32>
    %c0_7 = arith.constant 0 : index
    %c0_8 = arith.constant 0 : index
    %c0_9 = arith.constant 0 : index
    %15 = vector.load %arg6[%c0_7, %c0_8, %c0_9] : memref<1x1x512xf32, #tpu.memory_space<vmem>>, vector<1x1x512xf32>
    %16 = vector.shape_cast %15 : vector<1x1x512xf32> to vector<1x512xf32>
    %17 = vector.broadcast %16 : vector<1x512xf32> to vector<16x512xf32>
    %18 = arith.addf %14, %17 : vector<16x512xf32>
    %19 = vector.extract_strided_slice %18 {offsets = [0, 0], sizes = [16, 128], strides = [1, 1]} : vector<16x512xf32> to vector<16x128xf32>
    %20 = arith.negf %19 : vector<16x128xf32>
    %21 = math.exp %20 : vector<16x128xf32>
    %cst_10 = arith.constant 1.000000e+00 : f32
    %22 = vector.broadcast %cst_10 : f32 to vector<16x128xf32>
    %23 = arith.addf %22, %21 : vector<16x128xf32>
    %24 = arith.divf %22, %23 : vector<16x128xf32>
    %25 = vector.extract_strided_slice %18 {offsets = [0, 128], sizes = [16, 128], strides = [1, 1]} : vector<16x512xf32> to vector<16x128xf32>
    %26 = arith.negf %25 : vector<16x128xf32>
    %27 = math.exp %26 : vector<16x128xf32>
    %cst_11 = arith.constant 1.000000e+00 : f32
    %28 = vector.broadcast %cst_11 : f32 to vector<16x128xf32>
    %29 = arith.addf %28, %27 : vector<16x128xf32>
    %30 = arith.divf %28, %29 : vector<16x128xf32>
    %31 = vector.extract_strided_slice %18 {offsets = [0, 256], sizes = [16, 128], strides = [1, 1]} : vector<16x512xf32> to vector<16x128xf32>
    %32 = math.tanh %31 : vector<16x128xf32>
    %33 = vector.extract_strided_slice %18 {offsets = [0, 384], sizes = [16, 128], strides = [1, 1]} : vector<16x512xf32> to vector<16x128xf32>
    %34 = arith.negf %33 : vector<16x128xf32>
    %35 = math.exp %34 : vector<16x128xf32>
    %cst_12 = arith.constant 1.000000e+00 : f32
    %36 = vector.broadcast %cst_12 : f32 to vector<16x128xf32>
    %37 = arith.addf %36, %35 : vector<16x128xf32>
    %38 = arith.divf %36, %37 : vector<16x128xf32>
    %c0_13 = arith.constant 0 : index
    %c0_14 = arith.constant 0 : index
    %c0_15 = arith.constant 0 : index
    %39 = vector.load %arg4[%c0_13, %c0_14, %c0_15] : memref<1x16x128xf32, #tpu.memory_space<vmem>>, vector<1x16x128xf32>
    %40 = vector.shape_cast %39 : vector<1x16x128xf32> to vector<16x128xf32>
    %41 = arith.mulf %30, %40 : vector<16x128xf32>
    %42 = arith.mulf %24, %32 : vector<16x128xf32>
    %43 = arith.addf %41, %42 : vector<16x128xf32>
    %44 = math.tanh %43 : vector<16x128xf32>
    %45 = arith.mulf %38, %44 : vector<16x128xf32>
    %c0_16 = arith.constant 0 : index
    %c0_17 = arith.constant 0 : index
    %c0_18 = arith.constant 0 : index
    %46 = vector.load %arg7[%c0_16, %c0_17, %c0_18] : memref<1x16x128xf32, #tpu.memory_space<vmem>>, vector<1x16x128xf32>
    %47 = vector.shape_cast %46 : vector<1x16x128xf32> to vector<16x128xf32>
    %48 = vector.shape_cast %45 : vector<16x128xf32> to vector<1x16x128xf32>
    tpu.vector_store %arg7[%c0_16, %c0_17, %c0_18], %48 {strides = array<i32>} : memref<1x16x128xf32, #tpu.memory_space<vmem>>, vector<1x16x128xf32>,
    %c0_19 = arith.constant 0 : index
    %c0_20 = arith.constant 0 : index
    %c0_21 = arith.constant 0 : index
    %49 = vector.load %arg8[%c0_19, %c0_20, %c0_21] : memref<1x16x128xf32, #tpu.memory_space<vmem>>, vector<1x16x128xf32>
    %50 = vector.shape_cast %49 : vector<1x16x128xf32> to vector<16x128xf32>
    %51 = vector.shape_cast %43 : vector<16x128xf32> to vector<1x16x128xf32>
    tpu.vector_store %arg8[%c0_19, %c0_20, %c0_21], %51 {strides = array<i32>} : memref<1x16x128xf32, #tpu.memory_space<vmem>>, vector<1x16x128xf32>,
    %c1_i32 = arith.constant 1 : i32
    %52 = arith.addi %arg0, %c1_i32 : i32
    %c3_i32 = arith.constant 3 : i32
    %53 = arith.cmpi slt, %52, %c3_i32 : i32
    %54 = arith.extui %53 : i1 to i32
    %c0_i32_22 = arith.constant 0 : i32
    %55 = arith.cmpi ne, %54, %c0_i32_22 : i32
    scf.if %55 {
      %56 = arith.truncf %45 : vector<16x128xf32> to vector<16x128xbf16>
      %57 = arith.index_cast %1 : i32 to index
      %c0_23 = arith.constant 0 : index
      %58 = vector.load %arg9[%57, %c0_23] : memref<16x256xbf16, #tpu.memory_space<vmem>>, vector<16x128xbf16>
      tpu.vector_store %arg9[%57, %c0_23], %56 {strides = array<i32>} : memref<16x256xbf16, #tpu.memory_space<vmem>>, vector<16x128xbf16>,
    } else {
    }
    return
  }
  func.func @transform_0(%arg0: i32, %arg1: i32) -> (i32, i32) {
    %c0_i32 = arith.constant 0 : i32
    %c0_i32_0 = arith.constant 0 : i32
    return %arg1, %c0_i32 : i32, i32
  }
  func.func @transform_1(%arg0: i32, %arg1: i32) -> (i32, i32, i32) {
    %c0_i32 = arith.constant 0 : i32
    %c0_i32_0 = arith.constant 0 : i32
    return %arg0, %arg1, %c0_i32 : i32, i32, i32
  }
  func.func @transform_2(%arg0: i32, %arg1: i32) -> (i32, i32, i32) {
    %c0_i32 = arith.constant 0 : i32
    %c0_i32_0 = arith.constant 0 : i32
    return %arg0, %arg1, %c0_i32 : i32, i32, i32
  }
  func.func @transform_3(%arg0: i32, %arg1: i32) -> (i32, i32, i32) {
    %c0_i32 = arith.constant 0 : i32
    %c0_i32_0 = arith.constant 0 : i32
    %c0_i32_1 = arith.constant 0 : i32
    return %arg0, %c0_i32, %c0_i32_0 : i32, i32, i32
  }
  func.func @transform_4(%arg0: i32, %arg1: i32) -> (i32, i32, i32) {
    %c0_i32 = arith.constant 0 : i32
    %c0_i32_0 = arith.constant 0 : i32
    %c0_i32_1 = arith.constant 0 : i32
    return %arg0, %c0_i32, %c0_i32_0 : i32, i32, i32
  }
  func.func @transform_5(%arg0: i32, %arg1: i32) -> (i32, i32, i32) {
    %c0_i32 = arith.constant 0 : i32
    %c0_i32_0 = arith.constant 0 : i32
    return %arg0, %arg1, %c0_i32 : i32, i32, i32
  }
  func.func @transform_6(%arg0: i32, %arg1: i32) -> (i32, i32, i32) {
    %c0_i32 = arith.constant 0 : i32
    %c0_i32_0 = arith.constant 0 : i32
    return %arg0, %arg1, %c0_i32 : i32, i32, i32
  }
}

</mosaic_0001>

<bundles_post_ra>
// kernel: stacked_lstm_forward.1
= control target key start
LH: loop header
LB: loop body
LE: loop exit
PB: predicated region body
PF: predicated region fallthrough
CT: control target
= control target key end

     0   :  { %12 = vsyncpa [#allocation4], 0  ;;  %s1872_s0 = inlined_call_operand.vmem [shape: f32[16,128], index: 0, kind: input, shape index: {}]   ;;  %s1873_s1 = inlined_call_operand.vmem [shape: f32[3,16,128], index: 1, kind: input, shape index: {}, may-alias: {1,5}]   ;;  %s1874_s2 = inlined_call_operand.vmem [shape: f32[3,16,128], index: 2, kind: input, shape index: {}, may-alias: {2,6}]   ;;  %s1875_s3 = inlined_call_operand.hbm [shape: bf16[3,256,512], index: 3, kind: input, shape index: {}]   ;;  %s1876_s4 = inlined_call_operand.vmem [shape: f32[3,1,512], index: 4, kind: input, shape index: {}]   ;;  %s1877_s5 = inlined_call_operand.vmem [shape: f32[3,16,128], index: 5, kind: output, shape index: {0}, may-alias: {1,5}]   ;;  %s1878_s6 = inlined_call_operand.vmem [shape: f32[3,16,128], index: 6, kind: output, shape index: {1}, may-alias: {2,6}]  }
   0x1   :  { %14 = vsyncpa [#allocation4 + $0x1], 0  ;;  %s1669_s21 = smov 0   ;;  %s1671_s22 = smov 0  }
   0x2   :  { %s1673_s23 = smov 0   ;;  %s1675_s24 = smov 0  }
   0x3   :  { %s1677_s25 = smov 0   ;;  %s1679_s26 = smov 0  }
   0x4 LB: > { %s1251_s27 = sadd.s32 4294967295, %s1629_s26   ;;  %s32_s28 = sadd.s32 1, %s1625_s25  ;;  %s1629_s26 = sphi %s1679_s26, %s20_s26   ;;  %s1625_s25 = sphi %s1677_s25, %s1886_s25   ;;  %s1621_s24 = sphi %s1675_s24, %s1885_s24   ;;  %s1617_s23 = sphi %s1673_s23, %s1884_s23   ;;  %s1613_s22 = sphi %s1671_s22, %s1883_s22   ;;  %s1609_s21 = sphi %s1669_s21, %s1882_s21  }
   0x5   : > { %p34_p0 = scmp.ge.s32.totalorder %s32_s28, 3  ;;  %s121_s29 = sadd.s32 1, %s1617_s23 }
   0x6   : > { %p128_p1 = scmp.ne.s32.totalorder %s1617_s23, %s1613_s22  ;;  %p129_p2 = scmp.eq.s32.totalorder %s1629_s26, 0 }
   0x7   : > { %s1888_s28 = smov (%p34_p0, %s32_s28), 0  ;;  %p134_p4 = scmp.ne.s32.totalorder %s1613_s22, %s1609_s21 }
   0x8   : > { %p1705_p3 = por %p129_p2, %p128_p1  ;;  %s118_s7 = ssub.s32 %s1625_s25, %s1888_s28 }
   0x9   : > { %p135_p5 = scmp.eq.s32.totalorder %s1251_s27, 0  ;;  %p119_p6 = scmp.eq.s32.totalorder %s118_s7, 0 }
   0xa   : > { %p1369_p8 = scmp.lt.s32.totalorder %s1629_s26, 3  ;;  %s275_s10 = sand.u32 1, %s1617_s23  }
   0xb   : > { %p1712_p7 = por %p135_p5, %p134_p4  ;;  %s1352_s11 = sshll.u32 %s1625_s25, 13 }
   0xc   : > { %s1718_s9 = scalar_select %p119_p6, %s1617_s23, %s121_s29  }
   0xd   : > { %s1256_s12 = sshll.u32 %s275_s10, 9  ;;  %s285_s15 = scalar_lea.hbm %s1875_s3, %s1352_s11 }
   0xe   : > { %s279_s16 = scalar_lea.vmem [#allocation3], %s1256_s12  ;;  %p1727_p9 = pnand %p1369_p8, %p1705_p3 }
   0xf   : > { %s286_s17 = sshll.u32 %s279_s16, 4  ;;  %s276_s19 = scalar_lea.sflag [#allocation4], %s275_s10  ;;  %s287_s17 = int_to_ptr.vmem [resolvable:$true] %s286_s17 }
  0x10   : > { %p1553_p10 = pneg %p1727_p9  ;;  %s1564_s20 = scalar_lea.vmem %s287_s17, 8192 }
  0x11   : > { %p1565_p11 = scmp.ne.s32.totalorder %s287_s17, %s1564_s20  ;;  %s1631_s21 = smov [#allocation3]  }
  0x12   : > { %s1569_s27 = sshll.u32 %s1631_s21, 4  ;;  %s1570_s27 = int_to_ptr.vmem [resolvable:$false] %s1569_s27 }
  0x13   : > { %p1567_p12 = pnand %p1565_p11, %p1553_p10  ;;  %s1571_s29 = scalar_lea.vmem %s1570_s27, 16384 }
  0x14   : > { %p1572_p0 = scmp.lt.s32.totalorder %s287_s17, %s1570_s27  ;;  %p1573_p1 = scmp.lt.s32.totalorder %s1571_s29, %s1564_s20 }
  0x15   : > { %p1568_p13 = pneg %p1567_p12 }
  0x16   : > { %p1574_p2 = por %p1573_p1, %p1572_p0 }
  0x18   : > { %p1575_p3 = pnand %p1574_p2, %p1568_p13 }
  0x1a   : > { %1578 = shalt.err (!%p1575_p3)
}
  0x1b   : > { %s1632_s30 = smov 256   ;;  %s1633_s7 = smov 16  }
  0x1c   : > { %1368 = dma.hbm_to_vmem [thread:$0]  (!%p1727_p9), %s285_s15, 8192, %s287_s17, %s276_s19, %s1632_s30, %s1632_s30, %s1633_s7  }
  0x1d   : > { %p1259_p4 = scmp.ge.s32.totalorder %s1629_s26, 1  ;;  %p301_p5 = scmp.lt.s32.totalorder %s1629_s26, 4 }
  0x1f   : > { %p302_p6 = pnand %p1259_p4, %p301_p5 }
  0x20   : > { %s307_s10 = sand.u32 (!%p302_p6), 1, %s1613_s22  }
  0x21   : > { %305 = sbr.rel (%p302_p6) target bundleno = 373 (0x175), region = 40  ;;  %s1260_s11 = sshll.u32 (!%p302_p6), %s307_s10, 9 }
  0x22   : > { %s308_s12 = scalar_lea.sflag (!%p302_p6), [#allocation4], %s307_s10  ;;  %s1738_s13 = scalar_lea.vmem (!%p302_p6), [#allocation3], %s1260_s11 }
  0x26   : > { %1604 = dma.done.wait (%p1712_p7), %s308_s12, 8192  }
  0x27   : > { %1606 = vsyncadd (%p1712_p7), %s308_s12, 4294959104  ;;  %p387_p8 = scmp.lt.s32.totalorder %s1621_s24, 2  ;;  %p1270_p7 = scmp.ne.s32.totalorder %s1621_s24, 0 }
  0x29   : > { %s388_s14 = scalar_select %p387_p8, %s1621_s24, 2 }
  0x2a   : > { %434 = sbr.rel (%p1270_p7) target bundleno = 51 (0x33), region = 48 }
  0x2b   : > { %s1353_s15 = sshll.u32 %s388_s14, 4  ;;  %s1265_s16 = sshll.u32 %s388_s14, 2 }
  0x2c   : > { %s1749_s19 = scalar_lea.vmem %s1873_s1, %s1353_s15  ;;  %s1754_s27 = scalar_lea.vmem %s1874_s2, %s1353_s15 }
  0x2d   : > { %s1759_s8 = scalar_lea.vmem %s1876_s4, %s1265_s16  ;;  %s1764_s11 = scalar_lea.vmem %s1877_s5, %s1353_s15 }
  0x2e   : > { %s1769_s17 = scalar_lea.vmem %s1878_s6, %s1353_s15 }
  0x2f   : > { %v435_v0 = vld [vmem:[%s1872_s0] sm:$0xff]  ;;  %v436_v1 = vld [vmem:[%s1872_s0 + $0x8] sm:$0xff] }
  0x30   : > { %v1357_v2 = vpack.c.bf16 %v435_v0, %v435_v0  ;;  %v1358_v3 = vpack.c.bf16 %v436_v1, %v436_v1 }
  0x32   : > { %450 = vst [vmem:[#allocation2] sm:$0xf] %v1357_v2  ;;  %451 = vst [vmem:[#allocation2 + $0x8] sm:$0xf] %v1358_v3 }
  0x33 PF: > { %v1420_v4 = vld [vmem:[%s1738_s13 + $0xe4] ss:$16 sps:$4 sm:$0xff]   ;;  %v1422_v5 = vld [vmem:[%s1738_s13 + $0xe0] ss:$16 sps:$4 sm:$0xff]   ;;  %v1431_v9 = vld [vmem:[%s1738_s13 + $0xec] ss:$16 sps:$4 sm:$0xff]  }
  0x34   : > { %887 = vmatprep.subr.bf16.mxu0 %v1420_v4  ;;  %v1423_v6 = vld [vmem:[%s1738_s13 + $0xc4] ss:$16 sps:$4 sm:$0xff]   ;;  %v1425_v7 = vld [vmem:[%s1738_s13 + $0xc0] ss:$16 sps:$4 sm:$0xff]   ;;  %v1434_v10 = vld [vmem:[%s1738_s13 + $0xe8] ss:$16 sps:$4 sm:$0xff]   ;;  %930 = vmatprep.subr.bf16.mxu1 %v1431_v9 }
  0x35   : > { %888 = vmatpush1.bf16.msra.mxu0 %v1422_v5  ;;  %v1426_v8 = vld [vmem:[%s1738_s13 + $0xa4] ss:$16 sps:$4 sm:$0xff]   ;;  %v1428_v11 = vld [vmem:[%s1738_s13 + $0xa0] ss:$16 sps:$4 sm:$0xff]   ;;  %931 = vmatpush1.bf16.msra.mxu1 %v1434_v10  ;;  %v1437_v13 = vld [vmem:[%s1738_s13 + $0xcc] ss:$16 sps:$4 sm:$0xff]   ;;  %v537_v10 = vlaneseq }
  0x36   : > { %889 = vmatprep.subr.bf16.mxu0 %v1423_v6  ;;  %v1429_v12 = vld [vmem:[%s1738_s13 + $0x84] ss:$16 sps:$4 sm:$0xff]   ;;  %v1440_v14 = vld [vmem:[%s1738_s13 + $0xc8] ss:$16 sps:$4 sm:$0xff]   ;;  %932 = vmatprep.subr.bf16.mxu1 %v1437_v13  ;;  %v1433_v15 = vld [vmem:[%s1738_s13 + $0x80] ss:$16 sps:$4 sm:$0xff]  }
  0x37   : > { %v1435_v16 = vld [vmem:[%s1738_s13 + $0x64] ss:$16 sps:$4 sm:$0xff]   ;;  %v1443_v17 = vld [vmem:[%s1738_s13 + $0xac] ss:$16 sps:$4 sm:$0xff]   ;;  %v1446_v18 = vld [vmem:[%s1738_s13 + $0xa8] ss:$16 sps:$4 sm:$0xff]  }
  0x38   : > { %v1449_v19 = vld [vmem:[%s1738_s13 + $0x8c] ss:$16 sps:$4 sm:$0xff]   ;;  %v1439_v20 = vld [vmem:[%s1738_s13 + $0x60] ss:$16 sps:$4 sm:$0xff]   ;;  %v1441_v21 = vld [vmem:[%s1738_s13 + $0x44] ss:$16 sps:$4 sm:$0xff]  }
  0x39   : > { %890 = vmatpush1.bf16.msra.mxu0 %v1425_v7  ;;  %933 = vmatpush1.bf16.msra.mxu1 %v1440_v14  ;;  %v1452_v22 = vld [vmem:[%s1738_s13 + $0x88] ss:$16 sps:$4 sm:$0xff]   ;;  %v1455_v23 = vld [vmem:[%s1738_s13 + $0x6c] ss:$16 sps:$4 sm:$0xff]   ;;  %v1445_v24 = vld [vmem:[%s1738_s13 + $0x40] ss:$16 sps:$4 sm:$0xff]  }
  0x3a   : > { %891 = vmatprep.subr.bf16.mxu0 %v1426_v8  ;;  %934 = vmatprep.subr.bf16.mxu1 %v1443_v17  ;;  %v1447_v25 = vld [vmem:[%s1738_s13 + $0x24] ss:$16 sps:$4 sm:$0xff]   ;;  %v1458_v26 = vld [vmem:[%s1738_s13 + $0x68] ss:$16 sps:$4 sm:$0xff]   ;;  %v1461_v27 = vld [vmem:[%s1738_s13 + $0x4c] ss:$16 sps:$4 sm:$0xff]  }
  0x3b   : > { %v1451_v28 = vld [vmem:[%s1738_s13 + $0x20] ss:$16 sps:$4 sm:$0xff]   ;;  %v1453_v29 = vld [vmem:[%s1738_s13 + $0x4] ss:$16 sps:$4 sm:$0xff]   ;;  %v1464_v30 = vld [vmem:[%s1738_s13 + $0x48] ss:$16 sps:$4 sm:$0xff]  }
  0x3c   : > { %v1467_v31 = vld [vmem:[%s1738_s13 + $0x2c] ss:$16 sps:$4 sm:$0xff]   ;;  %v1457_v32 = vld [vmem:[%s1738_s13] ss:$16 sps:$4 sm:$0xff]   ;;  %v1459_v33 = vld [vmem:[%s1738_s13 + $0x1e4] ss:$16 sps:$4 sm:$0xff]  }
  0x3d   : > { %892 = vmatpush1.bf16.msra.mxu0 %v1428_v11  ;;  %935 = vmatpush1.bf16.msra.mxu1 %v1446_v18  ;;  %v1470_v34 = vld [vmem:[%s1738_s13 + $0x28] ss:$16 sps:$4 sm:$0xff]   ;;  %v1473_v35 = vld [vmem:[%s1738_s13 + $0xc] ss:$16 sps:$4 sm:$0xff]   ;;  %v1463_v36 = vld [vmem:[%s1738_s13 + $0x1e0] ss:$16 sps:$4 sm:$0xff]  }
  0x3e   : > { %893 = vmatprep.subr.bf16.mxu0 %v1429_v12  ;;  %936 = vmatprep.subr.bf16.mxu1 %v1449_v19  ;;  %v1465_v37 = vld [vmem:[%s1738_s13 + $0x1c4] ss:$16 sps:$4 sm:$0xff]   ;;  %v1476_v38 = vld [vmem:[%s1738_s13 + $0x8] ss:$16 sps:$4 sm:$0xff]   ;;  %v1479_v39 = vld [vmem:[%s1738_s13 + $0x1ec] ss:$16 sps:$4 sm:$0xff]  }
  0x3f   : > { %v1469_v40 = vld [vmem:[%s1738_s13 + $0x1c0] ss:$16 sps:$4 sm:$0xff]   ;;  %v1471_v41 = vld [vmem:[%s1738_s13 + $0x1a4] ss:$16 sps:$4 sm:$0xff]   ;;  %v1482_v42 = vld [vmem:[%s1738_s13 + $0x1e8] ss:$16 sps:$4 sm:$0xff]  }
  0x40   : > { %v1485_v43 = vld [vmem:[%s1738_s13 + $0x1cc] ss:$16 sps:$4 sm:$0xff]   ;;  %v1475_v44 = vld [vmem:[%s1738_s13 + $0x1a0] ss:$16 sps:$4 sm:$0xff]   ;;  %v1477_v48 = vld [vmem:[%s1738_s13 + $0x184] ss:$16 sps:$4 sm:$0xff]  }
  0x41   : > { %894 = vmatpush1.bf16.msra.mxu0 %v1433_v15  ;;  %937 = vmatpush1.bf16.msra.mxu1 %v1452_v22  ;;  %v452_v45 = vld [vmem:[%s1749_s19] sm:$0xff]  ;;  %v453_v46 = vld [vmem:[%s1749_s19 + $0x8] sm:$0xff]  ;;  %s1027_s15 = sadd.s32 1, %s1621_s24  ;;  %v538_v11 = vshrl.u32 %v537_v10, 7 }
  0x42   : > { %895 = vmatprep.subr.bf16.mxu0 %v1435_v16  ;;  %938 = vmatprep.subr.bf16.mxu1 %v1455_v23  ;;  %v1359_v47 = vpack.c.bf16 %v452_v45, %v452_v45  ;;  %v1488_v49 = vld [vmem:[%s1738_s13 + $0x1c8] ss:$16 sps:$4 sm:$0xff]   ;;  %v1360_v50 = vpack.c.bf16 %v453_v46, %v453_v46  ;;  %v1491_v51 = vld [vmem:[%s1738_s13 + $0x1ac] ss:$16 sps:$4 sm:$0xff]   ;;  %v1481_v52 = vld [vmem:[%s1738_s13 + $0x180] ss:$16 sps:$4 sm:$0xff]  }
  0x43   : > { %v1483_v53 = vld [vmem:[%s1738_s13 + $0x164] ss:$16 sps:$4 sm:$0xff]   ;;  %v1494_v54 = vld [vmem:[%s1738_s13 + $0x1a8] ss:$16 sps:$4 sm:$0xff]   ;;  %v1497_v55 = vld [vmem:[%s1738_s13 + $0x18c] ss:$16 sps:$4 sm:$0xff]  }
  0x44   : > { %467 = vst [vmem:[#allocation2 + $0x4] sm:$0xf] %v1359_v47  ;;  %468 = vst [vmem:[#allocation2 + $0xc] sm:$0xf] %v1360_v50  ;;  %v1487_v56 = vld [vmem:[%s1738_s13 + $0x160] ss:$16 sps:$4 sm:$0xff]  }
  0x45   : > { %896 = vmatpush1.bf16.msra.mxu0 %v1439_v20  ;;  %939 = vmatpush1.bf16.msra.mxu1 %v1458_v26  ;;  %v1489_v57 = vld [vmem:[%s1738_s13 + $0x144] ss:$16 sps:$4 sm:$0xff]   ;;  %v1500_v58 = vld [vmem:[%s1738_s13 + $0x188] ss:$16 sps:$4 sm:$0xff]   ;;  %v1503_v59 = vld [vmem:[%s1738_s13 + $0x16c] ss:$16 sps:$4 sm:$0xff]  }
  0x46   : > { %897 = vmatprep.subr.bf16.mxu0 %v1441_v21  ;;  %940 = vmatprep.subr.bf16.mxu1 %v1461_v27  ;;  %v1493_v61 = vld [vmem:[%s1738_s13 + $0x140] ss:$16 sps:$4 sm:$0xff]   ;;  %v1495_v62 = vld [vmem:[%s1738_s13 + $0x124] ss:$16 sps:$4 sm:$0xff]   ;;  %v1506_v63 = vld [vmem:[%s1738_s13 + $0x168] ss:$16 sps:$4 sm:$0xff]  }
  0x47   : > { %v1510_v0 = vld [vmem:[%s1738_s13 + $0x14c] ss:$16 sps:$4 sm:$0xff]   ;;  %v1499_v1 = vld [vmem:[%s1738_s13 + $0x120] ss:$16 sps:$4 sm:$0xff]   ;;  %v1501_v2 = vld [vmem:[%s1738_s13 + $0x104] ss:$16 sps:$4 sm:$0xff]  }
  0x48   : > { %v1512_v3 = vld [vmem:[%s1738_s13 + $0x148] ss:$16 sps:$4 sm:$0xff]   ;;  %v1513_v4 = vld [vmem:[%s1738_s13 + $0x12c] ss:$16 sps:$4 sm:$0xff]   ;;  %v1505_v5 = vld [vmem:[%s1738_s13 + $0x100] ss:$16 sps:$4 sm:$0xff]  }
  0x49   : > { %898 = vmatpush1.bf16.msra.mxu0 %v1445_v24  ;;  %941 = vmatpush1.bf16.msra.mxu1 %v1464_v30  ;;  %v1515_v6 = vld [vmem:[%s1738_s13 + $0x128] ss:$16 sps:$4 sm:$0xff]   ;;  %v1516_v7 = vld [vmem:[%s1738_s13 + $0x10c] ss:$16 sps:$4 sm:$0xff]   ;;  %v539_v12 = vsub.s32 0, %v538_v11  ;;  %v543_v14 = vsub.s32 1, %v538_v11 }
  0x4a   : > { %899 = vmatprep.subr.bf16.mxu0 %v1447_v25  ;;  %942 = vmatprep.subr.bf16.mxu1 %v1467_v31  ;;  %v1507_v8 = vld [vmem:[#allocation2] ss:$8 sps:$4 sm:$0xff]   ;;  %v551_v23 = vsub.s32 3, %v538_v11  ;;  %v547_v30 = vsub.s32 2, %v538_v11  ;;  %p1347_p9 = scmp.ge.s32.totalorder %s1027_s15, 3 }
  0x4b   : > { %v1509_v60 = vld [vmem:[#allocation2 + $0x4] ss:$8 sps:$4 sm:$0xff]   ;;  %v1518_v9 = vld [vmem:[%s1738_s13 + $0x108] ss:$16 sps:$4 sm:$0xff]   ;;  %v535_v13 = vld [vmem:[%s1759_s8] sm:$0xf] }
  0x4c   : > { %919 = vmatprep.mubr.bf16.mxu0 %v1509_v60  ;;  %962 = vmatprep.mubr.bf16.mxu1 %v1509_v60  ;;  %v540_v15 = vrot.slane %v535_v13, %v539_v12  ;;  %v544_v16 = vrot.slane %v535_v13, %v543_v14 }
  0x4d   : > { %900 = vmatpush1.bf16.msra.mxu0 %v1451_v28  ;;  %943 = vmatpush1.bf16.msra.mxu1 %v1470_v34 }
  0x4e   : > { %901 = vmatprep.subr.bf16.mxu0 %v1453_v29  ;;  %944 = vmatprep.subr.bf16.mxu1 %v1473_v35  ;;  %v548_v35 = vrot.slane %v535_v13, %v547_v30 }
  0x51   : > { %902 = vmatpush1.bf16.msra.mxu0 %v1457_v32  ;;  %945 = vmatpush1.bf16.msra.mxu1 %v1476_v38  ;;  %v552_v32 = vrot.slane %v535_v13, %v551_v23 }
  0x52   : > { %903 = vmatprep.subr.bf16.mxu0 %v1459_v33  ;;  %946 = vmatprep.subr.bf16.mxu1 %v1479_v39 }
  0x55   : > { %904 = vmatpush2.bf16.msra.mxu0 %v1463_v36  ;;  %947 = vmatpush2.bf16.msra.mxu1 %v1482_v42 }
  0x56   : > { %905 = vmatprep.subr.bf16.mxu0 %v1465_v37  ;;  %948 = vmatprep.subr.bf16.mxu1 %v1485_v43 }
  0x59   : > { %906 = vmatpush2.bf16.msra.mxu0 %v1469_v40  ;;  %949 = vmatpush2.bf16.msra.mxu1 %v1488_v49 }
  0x5a   : > { %907 = vmatprep.subr.bf16.mxu0 %v1471_v41  ;;  %950 = vmatprep.subr.bf16.mxu1 %v1491_v51 }
  0x5d   : > { %908 = vmatpush2.bf16.msra.mxu0 %v1475_v44  ;;  %951 = vmatpush2.bf16.msra.mxu1 %v1494_v54  ;;  %v1011_v54 = vld [vmem:[%s1754_s27] sm:$0xff] }
  0x5e   : > { %909 = vmatprep.subr.bf16.mxu0 %v1477_v48  ;;  %952 = vmatprep.subr.bf16.mxu1 %v1497_v55 }
  0x61   : > { %910 = vmatpush2.bf16.msra.mxu0 %v1481_v52  ;;  %953 = vmatpush2.bf16.msra.mxu1 %v1500_v58 }
  0x62   : > { %911 = vmatprep.subr.bf16.mxu0 %v1483_v53  ;;  %954 = vmatprep.subr.bf16.mxu1 %v1503_v59 }
  0x65   : > { %912 = vmatpush2.bf16.msra.mxu0 %v1487_v56  ;;  %955 = vmatpush2.bf16.msra.mxu1 %v1506_v63 }
  0x66   : > { %913 = vmatprep.subr.bf16.mxu0 %v1489_v57  ;;  %956 = vmatprep.subr.bf16.mxu1 %v1510_v0 }
  0x69   : > { %914 = vmatpush2.bf16.msra.mxu0 %v1493_v61  ;;  %957 = vmatpush2.bf16.msra.mxu1 %v1512_v3  ;;  %v1012_v61 = vld [vmem:[%s1754_s27 + $0x8] sm:$0xff] }
  0x6a   : > { %915 = vmatprep.subr.bf16.mxu0 %v1495_v62  ;;  %958 = vmatprep.subr.bf16.mxu1 %v1513_v4 }
  0x6d   : > { %916 = vmatpush2.bf16.msra.mxu0 %v1499_v1  ;;  %959 = vmatpush2.bf16.msra.mxu1 %v1515_v6 }
  0x6e   : > { %917 = vmatprep.subr.bf16.mxu0 %v1501_v2  ;;  %960 = vmatprep.subr.bf16.mxu1 %v1516_v7 }
  0x71   : > { %918 = vmatpush2.bf16.msra.mxu0 %v1505_v5  ;;  %961 = vmatpush2.bf16.msra.mxu1 %v1518_v9 }
  0x74   : > { %920 = vmatmul.mubr.bf16.vlgmr.msra.gmra.mxu0 %v1507_v8  ;;  %963 = vmatmul.mubr.bf16.vlgmr.msra.gmra.mxu1 %v1507_v8 }
 0x134   : > { %v921_v17 = vpop.f32.mrf.mxu0  ;;  %v964_v26 = vpop.f32.mrf.mxu1 }
 0x135   : > { %v922_v18 = vadd.f32 %v921_v17, %v540_v15  ;;  %v965_v38 = vadd.f32 %v964_v26, %v548_v35 }
 0x136   : > { %v923_v19 = vpop.f32.mrf.mxu0  ;;  %v966_v31 = vpop.f32.mrf.mxu1 }
 0x137   : > { %v1341_v20 = vmul.f32 -1.442695, %v922_v18  ;;  %v924_v21 = vadd.f32 %v923_v19, %v544_v16  ;;  %v967_v36 = vadd.f32 %v966_v31, %v552_v32 }
 0x138   : > { %v925_v22 = vpop.f32.mrf.mxu0  ;;  %v968_v34 = vpop.f32.mrf.mxu1 }
 0x139   : > { %1519 = vpow2.f32 %v1341_v20  ;;  %v1343_v24 = vmul.f32 -1.442695, %v924_v21  ;;  %v926_v25 = vadd.f32 %v925_v22, %v540_v15  ;;  %v1345_v39 = vmul.f32 -1.442695, %v967_v36 }
 0x13a   : > { %v927_v27 = vpop.f32.mrf.mxu0  ;;  %v970_v37 = vpop.f32.mrf.mxu1  ;;  %v969_v47 = vadd.f32 %v968_v34, %v548_v35 }
 0x13b   : > { %1521 = vpow2.f32 %v1343_v24  ;;  %v1342_v28 = vmul.f32 -1.442695, %v926_v25  ;;  %v928_v29 = vadd.f32 %v927_v27, %v544_v16  ;;  %v971_v40 = vadd.f32 %v970_v37, %v552_v32 }
 0x13d   : > { %1523 = vpow2.f32 %v1342_v28  ;;  %v1344_v33 = vmul.f32 -1.442695, %v928_v29  ;;  %v1346_v44 = vmul.f32 -1.442695, %v971_v40 }
 0x13f   : > { %1525 = vpow2.f32 %v1344_v33 }
 0x140   : > { %1527 = vtanh.f32 %v965_v38 }
 0x141   : > { %1529 = vpow2.f32 %v1345_v39 }
 0x146   : > { %v1520_v41 = vpop.eup %1519 }
 0x147   : > { %v979_v42 = vadd.f32 1.0, %v1520_v41 }
 0x148   : > { %v1522_v43 = vpop.eup %1521 }
 0x149   : > { %1531 = vrcp.f32 %v979_v42  ;;  %v991_v45 = vadd.f32 1.0, %v1522_v43 }
 0x14a   : > { %v1524_v46 = vpop.eup %1523 }
 0x14b   : > { %1533 = vrcp.f32 %v991_v45  ;;  %v980_v48 = vadd.f32 1.0, %v1524_v46 }
 0x14c   : > { %v1526_v49 = vpop.eup %1525  ;;  %1535 = vpow2.f32 %v1346_v44 }
 0x14d   : > { %1537 = vrcp.f32 %v980_v48  ;;  %v992_v50 = vadd.f32 1.0, %v1526_v49  ;;  %v1528_v51 = vpop.eup %1527 }
 0x14e   : > { %1539 = vtanh.f32 %v969_v47  ;;  %v1530_v52 = vpop.eup %1529 }
 0x14f   : > { %1541 = vrcp.f32 %v992_v50  ;;  %v1005_v56 = vadd.f32 1.0, %v1530_v52 }
 0x151   : > { %1543 = vrcp.f32 %v1005_v56 }
 0x156   : > { %v1532_v53 = vpop.eup %1531 }
 0x157   : > { %v1015_v59 = vmul.f32 %v1532_v53, %v1528_v51 }
 0x158   : > { %v1534_v55 = vpop.eup %1533 }
 0x159   : > { %v1536_v57 = vpop.eup %1535  ;;  %v1013_v58 = vmul.f32 %v1534_v55, %v1011_v54 }
 0x15a   : > { %v1538_v60 = vpop.eup %1537  ;;  %v1006_v1 = vadd.f32 1.0, %v1536_v57 }
 0x15b   : > { %v1540_v62 = vpop.eup %1539  ;;  %v1017_v63 = vadd.f32 %v1015_v59, %v1013_v58 }
 0x15c   : > { %v1542_v0 = vpop.eup %1541  ;;  %v1016_v3 = vmul.f32 %v1540_v62, %v1538_v60 }
 0x15d   : > { %1545 = vtanh.f32 %v1017_v63  ;;  %v1014_v2 = vmul.f32 %v1542_v0, %v1012_v61  ;;  %1025 = vst [vmem:[%s1769_s17] sm:$0xff] %v1017_v63 }
 0x15e   : > { %1547 = vrcp.f32 %v1006_v1  ;;  %v1544_v5 = vpop.eup %1543 }
 0x15f   : > { %v1018_v4 = vadd.f32 %v1016_v3, %v1014_v2 }
 0x161   : > { %1549 = vtanh.f32 %v1018_v4  ;;  %1026 = vst [vmem:[%s1769_s17 + $0x8] sm:$0xff] %v1018_v4 }
 0x16a   : > { %v1546_v6 = vpop.eup %1545 }
 0x16b   : > { %v1021_v7 = vmul.f32 %v1546_v6, %v1544_v5  ;;  %v1548_v8 = vpop.eup %1547 }
 0x16d   : > { %1023 = vst [vmem:[%s1764_s11] sm:$0xff] %v1021_v7  ;;  %1031 = sbr.rel (%p1347_p9) target bundleno = 373 (0x175), region = 52 }
 0x16e   : > { %v1550_v9 = vpop.eup %1549 }
 0x16f   : > { %v1022_v10 = vmul.f32 %v1550_v9, %v1548_v8 }
 0x171   : > { %1024 = vst [vmem:[%s1764_s11 + $0x8] sm:$0xff] %v1022_v10 }
 0x172   : > { %v1361_v11 = vpack.c.bf16 %v1021_v7, %v1021_v7  ;;  %v1362_v12 = vpack.c.bf16 %v1022_v10, %v1022_v10 }
 0x174   : > { %1040 = vst [vmem:[#allocation2] sm:$0xf] %v1361_v11  ;;  %1041 = vst [vmem:[#allocation2 + $0x8] sm:$0xf] %v1362_v12 }
 0x175 PF: > { %s20_s26 = sadd.s32 1, %s1629_s26   ;;  %s1882_s21 = smov %s1613_s22 }
 0x176   : > { %p17_p10 = scmp.ge.s32.totalorder %s20_s26, 5   ;;  %s1883_s22 = smov %s1617_s23 }
 0x177   : > { %s1884_s23 = smov %s1718_s9  ;;  %s1885_s24 = smov %s1625_s25 }
 0x178   : > { %s1886_s25 = smov %s1888_s28  ;;  %19 = sbr.rel (!%p17_p10) target bundleno = 4 (0x4), region = 114 }
 0x17d   :  { %1097 = vsyncpa [#allocation4], 1 }
 0x17e   :  { %1099 = vsyncpa [#allocation4 + $0x1], 1 }

</bundles_post_ra>
